<compile_context>
chip_gen: v6e
topology: v6e:2x2x1
jax: 0.10.0
libtpu: 0.0.40
codegen_flags: <defaults>
</compile_context>

<pallas_src>
import functools

import numpy as np
import jax
import jax.numpy as jnp
from jax.experimental import pallas as pl
from jax.experimental.pallas import tpu as pltpu


def _gaussian_kernel1d(kernel_size: int) -> np.ndarray:
    """Matches torchvision.transforms.functional.gaussian_blur defaults."""
    sigma = 0.3 * ((kernel_size - 1) * 0.5 - 1) + 0.8   # default sigma
    ksize_half = (kernel_size - 1) * 0.5
    x = np.linspace(-ksize_half, ksize_half, num=kernel_size)
    pdf = np.exp(-0.5 * (x / sigma) ** 2)
    return (pdf / pdf.sum()).astype(np.float32)


def _reflect_index(m: int, n: int) -> int:
    """F.pad(mode="reflect") index mapping (edge sample not repeated)."""
    if m < 0:
        return -m
    if m >= n:
        return 2 * (n - 1) - m
    return m


def _reflect_blur_matrix(n: int, weights: np.ndarray) -> np.ndarray:
    """(n, n) matrix A such that (row @ A)[j] is the reflect-padded 1D
    Gaussian blur of `row` evaluated at position j."""
    k = len(weights)
    r = k // 2
    a = np.zeros((n, n), dtype=np.float32)
    for j in range(n):
        for t in range(k):
            m = _reflect_index(j + t - r, n)
            a[m, j] += float(weights[t])
    return a


def _blur_kernel(x_ref, av_ref, ah_ref, o_ref, *, planes):
    # x_ref: (planes, H, W)   av_ref: (H, H)   ah_ref: (W, W)   o_ref: (planes, H, W)
    H, W = x_ref.shape[1], x_ref.shape[2]
    av = av_ref[...]
    ah = ah_ref[...]
    hi = jax.lax.Precision.HIGHEST

    if H % 8 == 0:
        # Horizontal pass collapsed across all planes: one tall MXU matmul.
        x = x_ref[...].astype(jnp.float32)                       # (P, H, W)
        tmp_all = jnp.dot(x.reshape(planes * H, W), ah,
                          preferred_element_type=jnp.float32,
                          precision=hi).reshape(planes, H, W)
        for p in range(planes):                                  # small static unroll
            out = jnp.dot(av, tmp_all[p],
                          preferred_element_type=jnp.float32, precision=hi)
            o_ref[p] = out.astype(o_ref.dtype)
    else:
        # Fallback: per-plane 2D matmuls (reshape above would need a relayout).
        for p in range(planes):
            xp = x_ref[p].astype(jnp.float32)                    # (H, W)
            tmp = jnp.dot(xp, ah,
                          preferred_element_type=jnp.float32, precision=hi)
            out = jnp.dot(av, tmp,
                          preferred_element_type=jnp.float32, precision=hi)
            o_ref[p] = out.astype(o_ref.dtype)


def _planes_per_step(n_planes: int, H: int, W: int) -> int:
    """How many (H, W) planes to process per grid step."""
    budget_bytes = 4 * 1024 * 1024            # per f32 input block (double-buffered)
    per_plane = H * W * 4
    cap = max(1, min(16, budget_bytes // max(per_plane, 1)))
    if n_planes >= 2:
        # keep >= 2 grid steps so both v7x TensorCores get work
        cap = min(cap, (n_planes + 1) // 2)
    cap = max(1, min(cap, n_planes))
    for d in range(cap, 0, -1):               # largest divisor -> exact blocks
        if n_planes % d == 0:
            return d
    return 1


def gaussian_blur_pallas(x: jax.Array, kernel_size: int) -> jax.Array:
    """x: (B, C, H, W) NCHW. Gaussian blur with reflect padding
    (torchvision gaussian_blur defaults). Same shape/dtype out."""
    assert kernel_size % 2 == 1, "kernel size must be odd"
    B, C, H, W = x.shape
    w = _gaussian_kernel1d(kernel_size)
    # tmp = plane @ ah   (horizontal pass);  out = av @ tmp   (vertical pass)
    ah = jnp.asarray(_reflect_blur_matrix(W, w))        # (W, W)
    av = jnp.asarray(_reflect_blur_matrix(H, w).T)      # (H, H)

    n_planes = B * C
    xf = x.reshape(n_planes, H, W)
    planes = _planes_per_step(n_planes, H, W)
    grid = (n_planes // planes,)

    kernel = functools.partial(_blur_kernel, planes=planes)

    # TODO(synk): for very large planes (>~1k x 1k) add halo'd H-strip tiling so
    # the per-step block stays inside v7x's 64 MiB VMEM and the dense blur
    # matrices stay small; not needed at this module's typical image sizes.
    out = pl.pallas_call(
        kernel,
        out_shape=jax.ShapeDtypeStruct((n_planes, H, W), x.dtype),
        grid_spec=pltpu.PrefetchScalarGridSpec(
            num_scalar_prefetch=0,
            grid=grid,
            in_specs=[
                # last two dims equal the full array dims -> legal block shapes
                pl.BlockSpec((planes, H, W), lambda i: (i, 0, 0)),
                pl.BlockSpec((H, H), lambda i: (0, 0)),
                pl.BlockSpec((W, W), lambda i: (0, 0)),
            ],
            out_specs=pl.BlockSpec((planes, H, W), lambda i: (i, 0, 0)),
        ),
        compiler_params=pltpu.CompilerParams(
            dimension_semantics=("parallel",),
            vmem_limit_bytes=48 * 1024 * 1024,
        ),
    )(xf, av, ah)
    return out.reshape(B, C, H, W)


class BlurPallas:
    """Mirror of noise_layers Blur: pick an odd kernel size in the given range,
    apply Gaussian blur to noised_and_cover[0]."""

    def __init__(self, kernel_size_scale, seed: int = 0):
        self.kernel_size_min, self.kernel_size_max = kernel_size_scale
        # deterministic in-script replacement for np.random.randint in forward
        self._rng = np.random.default_rng(seed)

    def __call__(self, noised_and_cover):
        b = int(self._rng.integers(self.kernel_size_min,
                                   self.kernel_size_max + 1))
        b = b - (1 - b % 2)  # force odd
        noised_image = noised_and_cover[0]
        noised_and_cover[0] = gaussian_blur_pallas(noised_image, b)
        return noised_and_cover


def _reference_blur(x, kernel_size):
    """Pure-JAX separable gaussian blur (reflect padding) for the check."""
    r = kernel_size // 2
    w = jnp.asarray(_gaussian_kernel1d(kernel_size))
    xp = jnp.pad(x, ((0, 0), (0, 0), (r, r), (r, r)), mode="reflect")
    H, W = x.shape[2], x.shape[3]
    tmp = sum(w[k] * xp[:, :, :, k:k + W] for k in range(kernel_size))
    out = sum(w[k] * tmp[:, :, k:k + H, :] for k in range(kernel_size))
    return out


if __name__ == "__main__":
    key = jax.random.PRNGKey(0)
    k_img, k_cov = jax.random.split(key)
    noised = jax.random.normal(k_img, (2, 4, 16, 16), dtype=jnp.float32)
    cover = jax.random.normal(k_cov, (2, 4, 16, 16), dtype=jnp.float32)

    blur = BlurPallas(kernel_size_scale=(3, 7), seed=0)
    out_list = blur([noised, cover])
    out = jax.block_until_ready(out_list[0])

    # Sanity check against a pure-JAX reference (same deterministic kernel size).
    rng_check = np.random.default_rng(0)
    b = int(rng_check.integers(3, 8))
    b = b - (1 - b % 2)
    ref = _reference_blur(noised, b)
    np.testing.assert_allclose(np.asarray(out), np.asarray(ref),
                               rtol=1e-4, atol=1e-4)

    print("KERNEL_OK")
</pallas_src>

<mosaic_0001>
module attributes {stable_mosaic.version = 11 : i64} {
  func.func @_blur_kernel(%arg0: i32, %arg1: memref<4x16x16xf32, #tpu.memory_space<vmem>>, %arg2: memref<16x16xf32, #tpu.memory_space<vmem>>, %arg3: memref<16x16xf32, #tpu.memory_space<vmem>>, %arg4: memref<4x16x16xf32, #tpu.memory_space<vmem>>) attributes {dimension_semantics = [#tpu.dimension_semantics<parallel>], iteration_bounds = array<i64: 2>, scalar_prefetch = 0 : i64, scratch_operands = 0 : i64, tpu.core_type = #tpu.core_type<tc>, window_params = [{transform_indices = @transform_0, window_bounds = array<i64: 4, 16, 16>}, {pipeline_mode = #tpu.pipeline_mode<synchronous>, transform_indices = @transform_1, window_bounds = array<i64: 16, 16>}, {pipeline_mode = #tpu.pipeline_mode<synchronous>, transform_indices = @transform_2, window_bounds = array<i64: 16, 16>}, {transform_indices = @transform_3, window_bounds = array<i64: 4, 16, 16>}]} {
    %c0 = arith.constant 0 : index
    %c0_0 = arith.constant 0 : index
    %0 = vector.load %arg2[%c0, %c0_0] : memref<16x16xf32, #tpu.memory_space<vmem>>, vector<16x16xf32>
    %c0_1 = arith.constant 0 : index
    %c0_2 = arith.constant 0 : index
    %1 = vector.load %arg3[%c0_1, %c0_2] : memref<16x16xf32, #tpu.memory_space<vmem>>, vector<16x16xf32>
    %c0_3 = arith.constant 0 : index
    %c0_4 = arith.constant 0 : index
    %c0_5 = arith.constant 0 : index
    %2 = vector.load %arg1[%c0_3, %c0_4, %c0_5] : memref<4x16x16xf32, #tpu.memory_space<vmem>>, vector<4x16x16xf32>
    %3 = vector.shape_cast %2 : vector<4x16x16xf32> to vector<64x16xf32>
    %cst = arith.constant dense<0.000000e+00> : vector<64x16xf32>
    %4 = tpu.matmul %3, %1, %cst {dimension_numbers = #tpu.dot_dimension_numbers<[1], [0], [0], [1], [0, 0, 1, 1], [], []>, precision = #tpu.contract_precision<fp32>} : vector<64x16xf32>, vector<16x16xf32>, vector<64x16xf32> -> vector<64x16xf32>
    %5 = vector.shape_cast %4 : vector<64x16xf32> to vector<4x16x16xf32>
    %6 = vector.extract_strided_slice %5 {offsets = [0, 0, 0], sizes = [1, 16, 16], strides = [1, 1, 1]} : vector<4x16x16xf32> to vector<1x16x16xf32>
    %7 = vector.shape_cast %6 : vector<1x16x16xf32> to vector<16x16xf32>
    %cst_6 = arith.constant dense<0.000000e+00> : vector<16x16xf32>
    %8 = tpu.matmul %0, %7, %cst_6 {dimension_numbers = #tpu.dot_dimension_numbers<[1], [0], [0], [1], [0, 0, 1, 1], [], []>, precision = #tpu.contract_precision<fp32>} : vector<16x16xf32>, vector<16x16xf32>, vector<16x16xf32> -> vector<16x16xf32>
    %c0_7 = arith.constant 0 : index
    %c0_8 = arith.constant 0 : index
    %c0_9 = arith.constant 0 : index
    %9 = vector.load %arg4[%c0_7, %c0_8, %c0_9] : memref<4x16x16xf32, #tpu.memory_space<vmem>>, vector<1x16x16xf32>
    %10 = vector.shape_cast %9 : vector<1x16x16xf32> to vector<16x16xf32>
    %11 = vector.shape_cast %8 : vector<16x16xf32> to vector<1x16x16xf32>
    tpu.vector_store %arg4[%c0_7, %c0_8, %c0_9], %11 {strides = array<i32>} : memref<4x16x16xf32, #tpu.memory_space<vmem>>, vector<1x16x16xf32>,
    %12 = vector.extract_strided_slice %5 {offsets = [1, 0, 0], sizes = [1, 16, 16], strides = [1, 1, 1]} : vector<4x16x16xf32> to vector<1x16x16xf32>
    %13 = vector.shape_cast %12 : vector<1x16x16xf32> to vector<16x16xf32>
    %cst_10 = arith.constant dense<0.000000e+00> : vector<16x16xf32>
    %14 = tpu.matmul %0, %13, %cst_10 {dimension_numbers = #tpu.dot_dimension_numbers<[1], [0], [0], [1], [0, 0, 1, 1], [], []>, precision = #tpu.contract_precision<fp32>} : vector<16x16xf32>, vector<16x16xf32>, vector<16x16xf32> -> vector<16x16xf32>
    %c1 = arith.constant 1 : index
    %c0_11 = arith.constant 0 : index
    %c0_12 = arith.constant 0 : index
    %15 = vector.load %arg4[%c1, %c0_11, %c0_12] : memref<4x16x16xf32, #tpu.memory_space<vmem>>, vector<1x16x16xf32>
    %16 = vector.shape_cast %15 : vector<1x16x16xf32> to vector<16x16xf32>
    %17 = vector.shape_cast %14 : vector<16x16xf32> to vector<1x16x16xf32>
    tpu.vector_store %arg4[%c1, %c0_11, %c0_12], %17 {strides = array<i32>} : memref<4x16x16xf32, #tpu.memory_space<vmem>>, vector<1x16x16xf32>,
    %18 = vector.extract_strided_slice %5 {offsets = [2, 0, 0], sizes = [1, 16, 16], strides = [1, 1, 1]} : vector<4x16x16xf32> to vector<1x16x16xf32>
    %19 = vector.shape_cast %18 : vector<1x16x16xf32> to vector<16x16xf32>
    %cst_13 = arith.constant dense<0.000000e+00> : vector<16x16xf32>
    %20 = tpu.matmul %0, %19, %cst_13 {dimension_numbers = #tpu.dot_dimension_numbers<[1], [0], [0], [1], [0, 0, 1, 1], [], []>, precision = #tpu.contract_precision<fp32>} : vector<16x16xf32>, vector<16x16xf32>, vector<16x16xf32> -> vector<16x16xf32>
    %c2 = arith.constant 2 : index
    %c0_14 = arith.constant 0 : index
    %c0_15 = arith.constant 0 : index
    %21 = vector.load %arg4[%c2, %c0_14, %c0_15] : memref<4x16x16xf32, #tpu.memory_space<vmem>>, vector<1x16x16xf32>
    %22 = vector.shape_cast %21 : vector<1x16x16xf32> to vector<16x16xf32>
    %23 = vector.shape_cast %20 : vector<16x16xf32> to vector<1x16x16xf32>
    tpu.vector_store %arg4[%c2, %c0_14, %c0_15], %23 {strides = array<i32>} : memref<4x16x16xf32, #tpu.memory_space<vmem>>, vector<1x16x16xf32>,
    %24 = vector.extract_strided_slice %5 {offsets = [3, 0, 0], sizes = [1, 16, 16], strides = [1, 1, 1]} : vector<4x16x16xf32> to vector<1x16x16xf32>
    %25 = vector.shape_cast %24 : vector<1x16x16xf32> to vector<16x16xf32>
    %cst_16 = arith.constant dense<0.000000e+00> : vector<16x16xf32>
    %26 = tpu.matmul %0, %25, %cst_16 {dimension_numbers = #tpu.dot_dimension_numbers<[1], [0], [0], [1], [0, 0, 1, 1], [], []>, precision = #tpu.contract_precision<fp32>} : vector<16x16xf32>, vector<16x16xf32>, vector<16x16xf32> -> vector<16x16xf32>
    %c3 = arith.constant 3 : index
    %c0_17 = arith.constant 0 : index
    %c0_18 = arith.constant 0 : index
    %27 = vector.load %arg4[%c3, %c0_17, %c0_18] : memref<4x16x16xf32, #tpu.memory_space<vmem>>, vector<1x16x16xf32>
    %28 = vector.shape_cast %27 : vector<1x16x16xf32> to vector<16x16xf32>
    %29 = vector.shape_cast %26 : vector<16x16xf32> to vector<1x16x16xf32>
    tpu.vector_store %arg4[%c3, %c0_17, %c0_18], %29 {strides = array<i32>} : memref<4x16x16xf32, #tpu.memory_space<vmem>>, vector<1x16x16xf32>,
    return
  }
  func.func @transform_0(%arg0: i32) -> (i32, i32, i32) {
    %c0_i32 = arith.constant 0 : i32
    %c0_i32_0 = arith.constant 0 : i32
    %c0_i32_1 = arith.constant 0 : i32
    return %arg0, %c0_i32, %c0_i32_0 : i32, i32, i32
  }
  func.func @transform_1(%arg0: i32) -> (i32, i32) {
    %c0_i32 = arith.constant 0 : i32
    %c0_i32_0 = arith.constant 0 : i32
    %c0_i32_1 = arith.constant 0 : i32
    return %c0_i32, %c0_i32_0 : i32, i32
  }
  func.func @transform_2(%arg0: i32) -> (i32, i32) {
    %c0_i32 = arith.constant 0 : i32
    %c0_i32_0 = arith.constant 0 : i32
    %c0_i32_1 = arith.constant 0 : i32
    return %c0_i32, %c0_i32_0 : i32, i32
  }
  func.func @transform_3(%arg0: i32) -> (i32, i32, i32) {
    %c0_i32 = arith.constant 0 : i32
    %c0_i32_0 = arith.constant 0 : i32
    %c0_i32_1 = arith.constant 0 : i32
    return %arg0, %c0_i32, %c0_i32_0 : i32, i32, i32
  }
}

</mosaic_0001>

<bundles_post_ra>
// kernel: tpu_custom_call.1
= control target key start
LH: loop header
LB: loop body
LE: loop exit
PB: predicated region body
PF: predicated region fallthrough
CT: control target
= control target key end

     0   :  { %8 = vsyncpa [#allocation3], 0  ;;  %s4404_s0 = inlined_call_operand.hbm [shape: f32[8,16,16], index: 0, kind: input, shape index: {}]   ;;  %s4405_s1 = inlined_call_operand.hbm [shape: f32[16,16], index: 1, kind: input, shape index: {}]   ;;  %s4406_s2 = inlined_call_operand.hbm [shape: f32[16,16], index: 2, kind: input, shape index: {}]   ;;  %s4407_s3 = inlined_call_operand.hbm [shape: f32[8,16,16], index: 3, kind: output, shape index: {}]  }
   0x1   :  { %10 = vsyncpa [#allocation3 + $0x1], 0 }
   0x2   :  { %11 = vsyncpa [#allocation6], 0 }
   0x3   :  { %12 = vsyncpa [#allocation4], 0 }
   0x4   :  { %14 = vsyncpa [#allocation4 + $0x1], 0  ;;  %s3849_s12 = smov 0   ;;  %s3851_s13 = smov 0  }
   0x5   :  { %s3853_s14 = smov 0   ;;  %s3855_s15 = smov 0  }
   0x6 LB: > { %s3870_s16 = sadd.s32 4294967295, %s3819_s15   ;;  %s3150_s17 = sadd.s32 4294967294, %s3819_s15   ;;  %s3819_s15 = sphi %s3855_s15, %s4428_s15   ;;  %s3815_s14 = sphi %s3853_s14, %s4427_s14   ;;  %s3811_s13 = sphi %s3851_s13, %s4426_s13   ;;  %s3807_s12 = sphi %s3849_s12, %s4425_s12  }
   0x7   : > { %p40_p0 = scmp.ne.s32.totalorder %s3811_s13, %s3807_s12  ;;  %p4408_p1 = scmp.eq.s32.totalorder %s3870_s16, 0 }
   0x8   : > { %p106_p2 = scmp.eq.s32.totalorder %s3870_s16, 1  ;;  %p112_p3 = scmp.eq.s32.totalorder %s3150_s17, 1 }
   0x9   : > { %p3879_p4 = por %p4408_p1, %p40_p0  ;;  %p3151_p5 = scmp.ge.s32.totalorder %s3819_s15, 1 }
   0xa   : > { %p3884_p6 = por %p112_p3, %p40_p0  ;;  %p119_p7 = scmp.lt.s32.totalorder %s3819_s15, 3 }
   0xb   : > { %s4412_s18 = scalar_select %p3879_p4, 1, 0 }
   0xc   : > { %s4413_s19 = scalar_select %p3884_p6, 1, 0 }
   0xd   : > { %p3889_p8 = pnand %p3151_p5, %p119_p7  ;;  %s3821_s21 = smov [#allocation5]  }
   0xe   : > { %s131_s22 = sshll.u32 %s3821_s21, 4  ;;  %s3822_s24 = smov [#allocation7]   ;;  %s132_s22 = int_to_ptr.vmem [resolvable:$true] %s131_s22 }
   0xf   : > { %s4414_s20 = scalar_select %p3889_p8, 1, 0 }
  0x10   : > { %p3612_p9 = pneg %p3889_p8  ;;  %s144_s25 = sshll.u32 %s3822_s24, 4  ;;  %s145_s25 = int_to_ptr.vmem [resolvable:$true] %s144_s25 }
  0x11   : > { %s3682_s26 = scalar_lea.vmem %s132_s22, 256  ;;  %p3690_p5 = scmp.lt.s32.totalorder %s132_s22, %s132_s22 }
  0x12   : > { %p3898_p11 = pnand %p3612_p9, %p4408_p1  ;;  %p3683_p13 = scmp.ne.s32.totalorder %s132_s22, %s3682_s26 }
  0x13   : > { %p3691_p7 = scmp.lt.s32.totalorder %s3682_s26, %s3682_s26 }
  0x14   : > { %p3673_p12 = pneg %p3898_p11 }
  0x15   : > { %p3692_p10 = por %p3691_p7, %p3690_p5 }
  0x16   : > { %p3685_p0 = pnand %p3683_p13, %p3673_p12 }
  0x18   : > { %p3686_p3 = pneg %p3685_p0 }
  0x1a   : > { %p3693_p9 = pnand %p3692_p10, %p3686_p3 }
  0x1c   : > { %3696 = shalt.err (!%p3693_p9)
}
  0x1d   : > { %s3823_s27 = smov 128   ;;  %s3824_s28 = smov 8  }
  0x1e   : > { %3615 = dma.hbm_to_vmem [thread:$0]  (!%p3898_p11), %s4405_s1, 256, %s132_s22, [#allocation6], %s3823_s27, %s3823_s27, %s3824_s28  }
  0x1f   : > { %s3708_s4 = scalar_lea.vmem %s145_s25, 256  ;;  %p3716_p10 = scmp.lt.s32.totalorder %s145_s25, %s145_s25 }
  0x20   : > { %p3709_p13 = scmp.ne.s32.totalorder %s145_s25, %s3708_s4  ;;  %p3717_p3 = scmp.lt.s32.totalorder %s3708_s4, %s3708_s4 }
  0x22   : > { %p3711_p0 = pnand %p3709_p13, %p3673_p12  ;;  %p3718_p7 = por %p3717_p3, %p3716_p10 }
  0x24   : > { %p3712_p5 = pneg %p3711_p0 }
  0x26   : > { %p3719_p9 = pnand %p3718_p7, %p3712_p5 }
  0x28   : > { %3722 = shalt.err (!%p3719_p9)
}
  0x29   : > { %3618 = dma.hbm_to_vmem [thread:$0]  (!%p3898_p11), %s4406_s2, 256, %s145_s25, [#allocation6], %s3823_s27, %s3823_s27, %s3824_s28  }
  0x2a   : > { %s3927_s7 = sadd.s32 1, %s3819_s15   ;;  %s27_s8 = sadd.s32 1, %s3815_s14 }
  0x2b   : > { %s24_s9 = ssub.s32 %s3819_s15, %s3927_s7  ;;  %p34_p12 = scmp.ne.s32.totalorder %s3815_s14, %s3811_s13 }
  0x2c   : > { %p25_p13 = scmp.eq.s32.totalorder %s24_s9, 0  ;;  %p35_p0 = scmp.eq.s32.totalorder %s3819_s15, 0 }
  0x2d   : > { %p3937_p5 = por %p106_p2, %p34_p12  ;;  %p3629_p10 = scmp.lt.s32.totalorder %s3819_s15, 2 }
  0x2e   : > { %s3943_s11 = scalar_select %p25_p13, %s3815_s14, %s27_s8  }
  0x2f   : > { %s4416_s10 = scalar_select %p3937_p5, 1, 0 }
  0x30   : > { %p36_p3 = por %p35_p0, %p34_p12  ;;  %s158_s17 = sand.u32 1, %s3815_s14  }
  0x31   : > { %s3155_s21 = sshll.u32 %s158_s17, 6  ;;  %s3177_s22 = sshll.u32 %s3819_s15, 10 }
  0x32   : > { %s3950_s25 = scalar_lea.hbm %s4404_s0, %s3177_s22  ;;  %s162_s26 = scalar_lea.vmem [#allocation2], %s3155_s21 }
  0x33   : > { %s170_s29 = sshll.u32 %s162_s26, 4  ;;  %p3954_p2 = pnand %p3629_p10, %p36_p3  ;;  %s3952_s29 = int_to_ptr.vmem [resolvable:$true] %s170_s29 }
  0x34   : > { %s3958_s4 = scalar_lea.sflag [#allocation3], %s158_s17  ;;  %s3723_s5 = scalar_lea.hbm %s3950_s25, 1024 }
  0x35   : > { %p3724_p11 = scmp.ne.s32.totalorder %s3950_s25, %s3723_s5  ;;  %p3725_p7 = pneg %p3954_p2 }
  0x36   : > { %s3728_s9 = scalar_lea.hbm %s4404_s0, 2048  ;;  %p3729_p13 = scmp.lt.s32.totalorder %s3950_s25, %s4404_s0 }
  0x37   : > { %p3726_p9 = pnand %p3725_p7, %p3724_p11  ;;  %p3730_p0 = scmp.lt.s32.totalorder %s3728_s9, %s3723_s5 }
  0x39   : > { %p3727_p12 = pneg %p3726_p9  ;;  %p3731_p10 = por %p3730_p0, %p3729_p13 }
  0x3b   : > { %p3732_p3 = pnand %p3731_p10, %p3727_p12 }
  0x3d   : > { %3735 = shalt.err (!%p3732_p3)
}
  0x3e   : > { %s3736_s17 = scalar_lea.vmem %s3952_s29, 1024  ;;  %s3825_s23 = smov [#allocation2]  }
  0x3f   : > { %p3737_p1 = scmp.ne.s32.totalorder %s3952_s29, %s3736_s17  ;;  %s3741_s24 = sshll.u32 %s3825_s23, 4  ;;  %s3742_s24 = int_to_ptr.vmem [resolvable:$false] %s3741_s24 }
  0x40   : > { %s3743_s26 = scalar_lea.vmem %s3742_s24, 2048  ;;  %p3744_p9 = scmp.lt.s32.totalorder %s3952_s29, %s3742_s24 }
  0x41   : > { %p3739_p6 = pnand %p3737_p1, %p3725_p7  ;;  %p3745_p5 = scmp.lt.s32.totalorder %s3743_s26, %s3736_s17 }
  0x43   : > { %p3740_p11 = pneg %p3739_p6  ;;  %p3746_p4 = por %p3745_p5, %p3744_p9 }
  0x45   : > { %p3747_p8 = pnand %p3746_p4, %p3740_p11 }
  0x47   : > { %3750 = shalt.err (!%p3747_p8)
}
  0x48   : > { %3622 = dma.hbm_to_vmem [thread:$0]  (!%p3954_p2), %s3950_s25, 1024, %s3952_s29, %s3958_s4, %s3823_s27, %s3823_s27, %s3824_s28  }
  0x49   : > { %p4418_p1 = scmp.ne.s32.totalorder %s4414_s20, 0 }
  0x4a   : > { %s3985_s5 = sand.u32 (!%p4418_p1), 1, %s3811_s13   ;;  %p4419_p4 = scmp.ne.s32.totalorder (!%p4418_p1), %s4412_s18, 0 }
  0x4b   : > { %182 = sbr.rel (%p4418_p1) target bundleno = 614 (0x266), region = 32  ;;  %s3160_s6 = sshll.u32 (!%p4418_p1), %s3985_s5, 6 }
  0x4c   : > { %s185_s8 = scalar_lea.sflag (!%p4418_p1), [#allocation3], %s3985_s5  ;;  %s3991_s30 = scalar_lea.vmem (!%p4418_p1), [#allocation2], %s3160_s6 }
  0x50   : > { %3794 = dma.done.wait (%p4419_p4), %s185_s8, 1024  }
  0x51   : > { %3796 = vsyncadd (%p4419_p4), %s185_s8, 4294966272  ;;  %p4420_p6 = scmp.eq.s32.totalorder %s3870_s16, 0 }
  0x53   : > { %3798 = dma.done.wait (%p4420_p6), [#allocation6], 512   ;;  %p4421_p8 = pmov %p4420_p6 }
  0x54   : > { %vm233_vm0 = vcmask 130048   ;;  %v224_v0 = vld [vmem:[#allocation7 + $0x8] sm:$0xff]  ;;  %v223_v1 = vld [vmem:[#allocation7] sm:$0xff]  ;;  %v225_v2 = vld [vmem:[%s3991_s30] sm:$0xff]  ;;  %s4336_s18 = scalar_lea.vmem [#allocation8], %s3160_s6  ;;  %s3179_s20 = sshll.u32 %s3870_s16, 10 }
  0x55   : > { %3800 = vsyncadd (%p4421_p8), [#allocation6], 4294966784  ;;  %v4002_v3 = vand.u32 4294901760, %v224_v0  ;;  %v4004_v4 = vand.u32 4294901760, %v223_v1  ;;  %v235_v5 = vsel %vm233_vm0, %v225_v2, 0  ;;  %v226_v6 = vld [vmem:[%s3991_s30 + $0x8] sm:$0xff]  ;;  %s4355_s29 = scalar_lea.hbm %s4407_s3, %s3179_s20 }
  0x56   : > { %v227_v7 = vld [vmem:[%s3991_s30 + $0x10] sm:$0xff]  ;;  %v228_v8 = vld [vmem:[%s3991_s30 + $0x18] sm:$0xff]  ;;  %v4010_v9 = vand.u32 4294901760, %v235_v5  ;;  %v238_v10 = vsel %vm233_vm0, %v226_v6, 0  ;;  %v229_v13 = vld [vmem:[%s3991_s30 + $0x20] sm:$0xff]  ;;  %s3058_s27 = sshll.u32 %s4336_s18, 4  ;;  %s4357_s27 = int_to_ptr.vmem [resolvable:$true] %s3058_s27 }
  0x57   : > { %v241_v11 = vsel %vm233_vm0, %v227_v7, 0  ;;  %v244_v12 = vsel %vm233_vm0, %v228_v8, 0  ;;  %v230_v14 = vld [vmem:[%s3991_s30 + $0x28] sm:$0xff]  ;;  %3336 = vmatprep.subr.mxu0 %v4002_v3  ;;  %v435_v15 = vsub.f32 %v224_v0, %v4002_v3  ;;  %v4019_v16 = vand.u32 4294901760, %v238_v10  ;;  %v231_v39 = vld [vmem:[%s3991_s30 + $0x30] sm:$0xff]  ;;  %v232_v40 = vld [vmem:[%s3991_s30 + $0x38] sm:$0xff] }
  0x58   : > { %v4022_v17 = vsub.f32 %v223_v1, %v4004_v4  ;;  %v4024_v18 = vand.u32 4294901760, %v241_v11  ;;  %3337 = vmatpush3.msra.mxu0 %v4002_v3  ;;  %v4028_v19 = vsub.f32 %v235_v5, %v4010_v9  ;;  %3356 = vmatprep.mubr.f32.mxu1 %v4010_v9  ;;  %v4031_v20 = vand.u32 4294901760, %v244_v12  ;;  %s3044_s16 = scalar_lea.sflag [#allocation4], %s3985_s5  ;;  %s3751_s4 = scalar_lea.vmem %s4357_s27, 1024 }
  0x59   : > { %v247_v21 = vsel %vm233_vm0, %v229_v13, 0  ;;  %v250_v22 = vsel %vm233_vm0, %v230_v14, 0  ;;  %3338 = vmatprep.subr.mxu0 %v4004_v4  ;;  %v4036_v23 = vand.u32 4294901760, %v435_v15  ;;  %v4039_v24 = vsub.f32 %v238_v10, %v4019_v16  ;;  %p3752_p5 = scmp.ne.s32.totalorder %s4357_s27, %s3751_s4  ;;  %p4422_p2 = scmp.ne.s32.totalorder %s4416_s10, 0 }
  0x5a   : > { %v4042_v25 = vand.u32 4294901760, %v4022_v17  ;;  %v4045_v26 = vsub.f32 %v241_v11, %v4024_v18  ;;  %3339 = vmatpush3.msra.mxu0 %v4004_v4  ;;  %v327_v27 = vand.u32 4294901760, %v4028_v19  ;;  %v4050_v28 = vsub.f32 %v244_v12, %v4031_v20  ;;  %s3826_s9 = smov [#allocation8]  }
  0x5b   : > { %v4052_v29 = vand.u32 4294901760, %v247_v21  ;;  %v4054_v30 = vand.u32 4294901760, %v250_v22  ;;  %v437_v31 = vsub.f32 %v435_v15, %v4036_v23  ;;  %v337_v32 = vand.u32 4294901760, %v4039_v24  ;;  %3368 = vmatprep.subr.mxu0 %v435_v15  ;;  %p3753_p7 = pnand %p3752_p5, %p4422_p2  ;;  %s3755_s21 = sshll.u32 %s3826_s9, 4  ;;  %s3756_s21 = int_to_ptr.vmem [resolvable:$false] %s3755_s21 }
  0x5c   : > { %v444_v33 = vsub.f32 %v4022_v17, %v4042_v25  ;;  %v347_v34 = vand.u32 4294901760, %v4045_v26  ;;  %v328_v35 = vsub.f32 %v4028_v19, %v327_v27  ;;  %v357_v36 = vand.u32 4294901760, %v4050_v28  ;;  %s3757_s22 = scalar_lea.vmem %s3756_s21, 2048  ;;  %p3758_p13 = scmp.lt.s32.totalorder %s4357_s27, %s3756_s21 }
  0x5d   : > { %v4066_v37 = vsub.f32 %v247_v21, %v4052_v29  ;;  %v4069_v38 = vsub.f32 %v250_v22, %v4054_v30  ;;  %v438_v41 = vand.u32 4294901760, %v437_v31  ;;  %v338_v42 = vsub.f32 %v4039_v24, %v337_v32  ;;  %p3754_p12 = pneg %p3753_p7  ;;  %p3759_p0 = scmp.lt.s32.totalorder %s3757_s22, %s3751_s4 }
  0x5e   : > { %v445_v43 = vand.u32 4294901760, %v444_v33  ;;  %v348_v44 = vsub.f32 %v4045_v26, %v347_v34  ;;  %v329_v45 = vand.u32 4294901760, %v328_v35  ;;  %v358_v46 = vsub.f32 %v4050_v28, %v357_v36 }
  0x5f   : > { %v367_v47 = vand.u32 4294901760, %v4066_v37  ;;  %v377_v48 = vand.u32 4294901760, %v4069_v38  ;;  %3352 = vmatprep.subr.mxu1 %v438_v41  ;;  %v339_v49 = vand.u32 4294901760, %v338_v42  ;;  %v253_v51 = vsel %vm233_vm0, %v231_v39, 0  ;;  %p3760_p10 = por %p3759_p0, %p3758_p13 }
  0x60   : > { %v349_v50 = vand.u32 4294901760, %v348_v44  ;;  %v256_v52 = vsel %vm233_vm0, %v232_v40, 0  ;;  %3340 = vmatprep.mubr.f32.mxu0 %v329_v45  ;;  %3353 = vmatpush3.msra.mxu1 %v438_v41  ;;  %v4087_v54 = vand.u32 4294901760, %v253_v51  ;;  %v359_v55 = vand.u32 4294901760, %v358_v46 }
  0x61   : > { %v368_v53 = vsub.f32 %v4066_v37, %v367_v47  ;;  %3341 = vmatmul.mubr.f32.vlgmr.msra.gmra.mxu0 %v339_v49  ;;  %3354 = vmatprep.subr.mxu1 %v445_v43  ;;  %v378_v56 = vsub.f32 %v4069_v38, %v377_v48  ;;  %v4092_v57 = vand.u32 4294901760, %v256_v52  ;;  %p3761_p3 = pnand %p3760_p10, %p3754_p12 }
  0x62   : > { %3355 = vmatpush3.msra.mxu1 %v445_v43  ;;  %3343 = vmatprep.mubr.f32.mxu0 %v349_v50  ;;  %v386_v59 = vsub.f32 %v253_v51, %v4087_v54 }
  0x63   : > { %v369_v58 = vand.u32 4294901760, %v368_v53  ;;  %3357 = vmatmul.mubr.f32.vlgmr.msra.gmra.mxu1 %v4019_v16  ;;  %v396_v60 = vsub.f32 %v256_v52, %v4092_v57  ;;  %3369 = vmatpush3.msra.mxu0 %v435_v15  ;;  %v379_v62 = vand.u32 4294901760, %v378_v56 }
  0x64   : > { %3359 = vmatprep.mubr.f32.mxu1 %v4024_v18  ;;  %v387_v61 = vand.u32 4294901760, %v386_v59  ;;  %3370 = vmatprep.subr.mxu0 %v4022_v17 }
  0x65   : > { %3344 = vmatmul.mubr.f32.gmra.mxu0 %v359_v55  ;;  %v397_v63 = vand.u32 4294901760, %v396_v60  ;;  %3384 = vmatprep.subr.mxu1 %v4002_v3 }
  0x66   : > { %3346 = vmatprep.mubr.f32.mxu0 %v369_v58  ;;  %v388_v0 = vsub.f32 %v386_v59, %v387_v61  ;;  %3371 = vmatpush3.msra.mxu0 %v4022_v17 }
  0x67   : > { %3360 = vmatmul.mubr.f32.gmra.mxu1 %v4031_v20  ;;  %v398_v1 = vsub.f32 %v396_v60, %v397_v63  ;;  %3400 = vmatprep.subr.mxu0 %v4036_v23 }
  0x68   : > { %3362 = vmatprep.mubr.f32.mxu1 %v4052_v29  ;;  %v389_v2 = vand.u32 4294901760, %v388_v0  ;;  %3385 = vmatpush3.msra.mxu1 %v4002_v3 }
  0x69   : > { %3347 = vmatmul.mubr.f32.gmra.mxu0 %v379_v62  ;;  %v399_v5 = vand.u32 4294901760, %v398_v1  ;;  %3386 = vmatprep.subr.mxu1 %v4004_v4 }
  0x6a   : > { %3349 = vmatprep.mubr.f32.mxu0 %v389_v2  ;;  %3387 = vmatpush3.msra.mxu1 %v4004_v4 }
  0x6b   : > { %3363 = vmatmul.mubr.f32.gmra.mxu1 %v4054_v30  ;;  %3416 = vmatprep.subr.mxu1 %v4002_v3 }
  0x6c   : > { %3365 = vmatprep.mubr.f32.mxu1 %v4087_v54 }
  0x6d   : > { %3350 = vmatmul.mubr.f32.gmra.mxu0 %v399_v5 }
  0x6e   : > { %3372 = vmatprep.mubr.f32.mxu0 %v4028_v19 }
  0x6f   : > { %3366 = vmatmul.mubr.f32.gmra.mxu1 %v4092_v57 }
  0x70   : > { %3388 = vmatprep.mubr.f32.mxu1 %v327_v27 }
  0x71   : > { %3373 = vmatmul.mubr.f32.vlgmr.msra.gmra.mxu0 %v4039_v24 }
  0x72   : > { %3375 = vmatprep.mubr.f32.mxu0 %v4045_v26  ;;  %3401 = vmatpush3.msra.mxu0 %v4036_v23 }
  0x73   : > { %3389 = vmatmul.mubr.f32.vlgmr.msra.gmra.mxu1 %v337_v32  ;;  %3402 = vmatprep.subr.mxu0 %v4042_v25 }
  0x74   : > { %3391 = vmatprep.mubr.f32.mxu1 %v347_v34  ;;  %3403 = vmatpush3.msra.mxu0 %v4042_v25 }
  0x75   : > { %3376 = vmatmul.mubr.f32.gmra.mxu0 %v4050_v28  ;;  %3417 = vmatpush3.msra.mxu1 %v4002_v3  ;;  %v221_v3 = vld [vmem:[#allocation5] sm:$0xff]  ;;  %v222_v28 = vld [vmem:[#allocation5 + $0x8] sm:$0xff] }
  0x76   : > { %3378 = vmatprep.mubr.f32.mxu0 %v4066_v37  ;;  %3418 = vmatprep.subr.mxu1 %v4004_v4  ;;  %v1022_v31 = vsel %vm233_vm0, %v222_v28, 0 }
  0x77   : > { %3392 = vmatmul.mubr.f32.gmra.mxu1 %v357_v36  ;;  %v4181_v36 = vand.u32 4294901760, %v1022_v31 }
  0x78   : > { %3394 = vmatprep.mubr.f32.mxu1 %v367_v47  ;;  %3419 = vmatpush3.msra.mxu1 %v4004_v4  ;;  %v1019_v4 = vsel %vm233_vm0, %v221_v3, 0 }
  0x79   : > { %3379 = vmatmul.mubr.f32.gmra.mxu0 %v4069_v38  ;;  %v4150_v6 = vand.u32 4294901760, %v1019_v4  ;;  %v4190_v42 = vsub.f32 %v1022_v31, %v4181_v36 }
  0x7a   : > { %3381 = vmatprep.mubr.f32.mxu0 %v386_v59 }
  0x7b   : > { %3395 = vmatmul.mubr.f32.gmra.mxu1 %v377_v48  ;;  %v4153_v7 = vsub.f32 %v1019_v4, %v4150_v6  ;;  %v4201_v51 = vand.u32 4294901760, %v4190_v42 }
  0x7c   : > { %3397 = vmatprep.mubr.f32.mxu1 %v387_v61 }
  0x7d   : > { %3382 = vmatmul.mubr.f32.gmra.mxu0 %v396_v60  ;;  %v4157_v8 = vand.u32 4294901760, %v4153_v7  ;;  %v1104_v61 = vsub.f32 %v4190_v42, %v4201_v51 }
  0x7e   : > { %3404 = vmatprep.mubr.f32.mxu0 %v4010_v9 }
  0x7f   : > { %3398 = vmatmul.mubr.f32.gmra.mxu1 %v397_v63 }
  0x80   : > { %3420 = vmatprep.mubr.f32.mxu1 %v4010_v9  ;;  %v1094_v9 = vsub.f32 %v4153_v7, %v4157_v8 }
  0x81   : > { %3405 = vmatmul.mubr.f32.vlgmr.msra.gmra.mxu0 %v4019_v16 }
  0x82   : > { %3407 = vmatprep.mubr.f32.mxu0 %v4024_v18  ;;  %v4161_v10 = vand.u32 4294901760, %v1094_v9 }
  0x83   : > { %3421 = vmatmul.mubr.f32.vlgmr.msra.gmra.mxu1 %v4019_v16 }
  0x84   : > { %3423 = vmatprep.mubr.f32.mxu1 %v4024_v18 }
  0x85   : > { %3408 = vmatmul.mubr.f32.gmra.mxu0 %v4031_v20 }
  0x86   : > { %3410 = vmatprep.mubr.f32.mxu0 %v4052_v29 }
  0x87   : > { %3424 = vmatmul.mubr.f32.gmra.mxu1 %v4031_v20 }
  0x88   : > { %3426 = vmatprep.mubr.f32.mxu1 %v4052_v29 }
  0x89   : > { %3411 = vmatmul.mubr.f32.gmra.mxu0 %v4054_v30 }
  0x8a   : > { %3413 = vmatprep.mubr.f32.mxu0 %v4087_v54 }
  0x8b   : > { %3427 = vmatmul.mubr.f32.gmra.mxu1 %v4054_v30 }
  0x8c   : > { %3429 = vmatprep.mubr.f32.mxu1 %v4087_v54 }
  0x8d   : > { %3414 = vmatmul.mubr.f32.gmra.mxu0 %v4092_v57 }
  0x8e   : > { %3436 = vmatprep.mubr.f32.mxu0 %v4161_v10 }
  0x8f   : > { %3430 = vmatmul.mubr.f32.gmra.mxu1 %v4092_v57 }
  0x90   : > { %3443 = vmatprep.mubr.f32.mxu1 %v4150_v6 }
 0x121   : > { %v3342_v11 = vpop.f32.mrf.mxu0 }
 0x123   : > { %v331_v12 = vpop.f32.mrf.mxu0  ;;  %v3358_v13 = vpop.f32.mrf.mxu1 }
 0x124   : > { %v489_v39 = vadd.f32 %v3358_v13, %v3342_v11 }
 0x125   : > { %v3345_v14 = vpop.f32.mrf.mxu0  ;;  %v482_v15 = vpop.f32.mrf.mxu1 }
 0x126   : > { %v483_v43 = vadd.f32 %v482_v15, %v331_v12 }
 0x127   : > { %v351_v16 = vpop.f32.mrf.mxu0  ;;  %v3361_v17 = vpop.f32.mrf.mxu1 }
 0x128   : > { %v501_v47 = vadd.f32 %v3361_v17, %v3345_v14 }
 0x129   : > { %v4164_v18 = vpop.f32.mrf.mxu0  ;;  %v494_v19 = vpop.f32.mrf.mxu1 }
 0x12a   : > { %v495_v56 = vadd.f32 %v494_v19, %v351_v16  ;;  %v4213_v16 = vand.u32 4294901760, %v1104_v61 }
 0x12b   : > { %v4166_v20 = vpop.f32.mrf.mxu0  ;;  %v4168_v21 = vpop.f32.mrf.mxu1 }
 0x12d   : > { %v4170_v22 = vpop.f32.mrf.mxu0  ;;  %v4172_v23 = vpop.f32.mrf.mxu1 }
 0x12f   : > { %v4174_v24 = vpop.f32.mrf.mxu0  ;;  %v4176_v25 = vpop.f32.mrf.mxu1 }
 0x131   : > { %v4178_v26 = vpop.f32.mrf.mxu1  ;;  %v3374_v27 = vpop.f32.mrf.mxu0 }
 0x132   : > { %v608_v44 = vadd.f32 %v3374_v27, %v489_v39 }
 0x133   : > { %v600_v29 = vpop.f32.mrf.mxu0  ;;  %v3390_v30 = vpop.f32.mrf.mxu1 }
 0x134   : > { %v601_v48 = vadd.f32 %v600_v29, %v483_v43  ;;  %v733_v52 = vadd.f32 %v3390_v30, %v608_v44 }
 0x135   : > { %v3377_v32 = vpop.f32.mrf.mxu0  ;;  %v724_v33 = vpop.f32.mrf.mxu1 }
 0x136   : > { %v622_v53 = vadd.f32 %v3377_v32, %v501_v47  ;;  %v725_v57 = vadd.f32 %v724_v33, %v601_v48  ;;  %v507_v48 = vadd.f32 %v4172_v23, %v4166_v20 }
 0x137   : > { %v614_v34 = vpop.f32.mrf.mxu0  ;;  %v3393_v35 = vpop.f32.mrf.mxu1 }
 0x138   : > { %v615_v62 = vadd.f32 %v614_v34, %v495_v56  ;;  %v749_v63 = vadd.f32 %v3393_v35, %v622_v53 }
 0x139   : > { %v4183_v37 = vpop.f32.mrf.mxu0  ;;  %v740_v38 = vpop.f32.mrf.mxu1 }
 0x13a   : > { %v741_v13 = vadd.f32 %v740_v38, %v615_v62  ;;  %v513_v38 = vadd.f32 %v4168_v21, %v4164_v18 }
 0x13b   : > { %v4185_v40 = vpop.f32.mrf.mxu0  ;;  %v4187_v41 = vpop.f32.mrf.mxu1 }
 0x13c   : > { %v636_v43 = vadd.f32 %v4183_v37, %v513_v38  ;;  %v629_v21 = vadd.f32 %v4185_v40, %v507_v48 }
 0x13d   : > { %v4192_v45 = vpop.f32.mrf.mxu0  ;;  %v4194_v46 = vpop.f32.mrf.mxu1 }
 0x13e   : > { %v765_v37 = vadd.f32 %v4187_v41, %v636_v43  ;;  %v757_v41 = vadd.f32 %v4194_v46, %v629_v21 }
 0x13f   : > { %v4196_v49 = vpop.f32.mrf.mxu0  ;;  %v4198_v50 = vpop.f32.mrf.mxu1 }
 0x141   : > { %v4203_v54 = vpop.f32.mrf.mxu1  ;;  %v3406_v55 = vpop.f32.mrf.mxu0 }
 0x142   : > { %v864_v58 = vadd.f32 %v3406_v55, %v733_v52 }
 0x143   : > { %v857_v59 = vpop.f32.mrf.mxu0  ;;  %v3422_v60 = vpop.f32.mrf.mxu1 }
 0x144   : > { %v858_v0 = vadd.f32 %v857_v59, %v725_v57  ;;  %v979_v1 = vadd.f32 %v3422_v60, %v864_v58 }
 0x145   : > { %v3409_v2 = vpop.f32.mrf.mxu0  ;;  %v972_v5 = vpop.f32.mrf.mxu1 }
 0x146   : > { %v4207_v3 = vand.u32 4294901760, %v979_v1  ;;  %v876_v4 = vadd.f32 %v3409_v2, %v749_v63  ;;  %v973_v9 = vadd.f32 %v972_v5, %v858_v0  ;;  %v525_v63 = vadd.f32 %v4176_v25, %v4170_v22 }
 0x147   : > { %v869_v11 = vpop.f32.mrf.mxu0  ;;  %v3425_v12 = vpop.f32.mrf.mxu1  ;;  %v519_v22 = vadd.f32 %v4178_v26, %v4174_v24 }
 0x148   : > { %v1141_v14 = vsub.f32 %v979_v1, %v4207_v3  ;;  %v4210_v15 = vand.u32 4294901760, %v973_v9  ;;  %3432 = vmatprep.subr.mxu0 %v4207_v3  ;;  %v870_v19 = vadd.f32 %v869_v11, %v741_v13  ;;  %v991_v27 = vadd.f32 %v3425_v12, %v876_v4 }
 0x149   : > { %3433 = vmatpush3.msra.mxu0 %v4207_v3  ;;  %v984_v28 = vpop.f32.mrf.mxu1  ;;  %v3412_v18 = vpop.f32.mrf.mxu0  ;;  %v650_v1 = vadd.f32 %v4192_v45, %v525_v63  ;;  %v643_v45 = vadd.f32 %v4196_v49, %v519_v22 }
 0x14a   : > { %v1148_v17 = vsub.f32 %v973_v9, %v4210_v15  ;;  %3434 = vmatprep.subr.mxu0 %v4210_v15  ;;  %v1142_v29 = vand.u32 4294901760, %v1141_v14  ;;  %v4221_v32 = vand.u32 4294901760, %v991_v27  ;;  %v985_v33 = vadd.f32 %v984_v28, %v870_v19 }
 0x14b   : > { %3435 = vmatpush3.msra.mxu0 %v4210_v15  ;;  %v888_v20 = vadd.f32 %v3412_v18, %v765_v37  ;;  %v881_v23 = vpop.f32.mrf.mxu0  ;;  %v3428_v40 = vpop.f32.mrf.mxu1 }
 0x14c   : > { %3446 = vmatprep.subr.mxu0 %v1141_v14  ;;  %3437 = vmatmul.mubr.f32.vlgmr.msra.gmra.mxu0 %v4213_v16  ;;  %v1143_v30 = vsub.f32 %v1141_v14, %v1142_v29  ;;  %v1149_v31 = vand.u32 4294901760, %v1148_v17  ;;  %v1645_v44 = vsub.f32 %v991_v27, %v4221_v32  ;;  %v4228_v47 = vand.u32 4294901760, %v985_v33 }
 0x14d   : > { %3447 = vmatpush3.msra.mxu0 %v1141_v14  ;;  %3450 = vmatprep.mubr.f32.mxu0 %v4153_v7  ;;  %v882_v57 = vadd.f32 %v881_v23, %v757_v41  ;;  %v1003_v58 = vadd.f32 %v3428_v40, %v888_v20  ;;  %v996_v59 = vpop.f32.mrf.mxu1  ;;  %v3415_v25 = vpop.f32.mrf.mxu0 }
 0x14e   : > { %3448 = vmatprep.subr.mxu0 %v1148_v17  ;;  %v1144_v34 = vand.u32 4294901760, %v1143_v30  ;;  %v1150_v35 = vsub.f32 %v1148_v17, %v1149_v31  ;;  %v1652_v52 = vsub.f32 %v985_v33, %v4228_v47  ;;  %v1646_v53 = vand.u32 4294901760, %v1645_v44 }
 0x14f   : > { %3449 = vmatpush3.msra.mxu0 %v1148_v17  ;;  %v4255_v61 = vand.u32 4294901760, %v1003_v58  ;;  %v997_v62 = vadd.f32 %v996_v59, %v882_v57  ;;  %v893_v9 = vpop.f32.mrf.mxu0  ;;  %v3431_v49 = vpop.f32.mrf.mxu1 }
 0x150   : > { %3460 = vmatprep.subr.mxu0 %v1142_v29  ;;  %3451 = vmatmul.mubr.f32.vlgmr.msra.gmra.mxu0 %v4190_v42  ;;  %v1151_v39 = vand.u32 4294901760, %v1150_v35  ;;  %v1647_v55 = vsub.f32 %v1645_v44, %v1646_v53  ;;  %v1653_v56 = vand.u32 4294901760, %v1652_v52 }
 0x151   : > { %3439 = vmatprep.subr.mxu1 %v1144_v34  ;;  %3461 = vmatpush3.msra.mxu0 %v1142_v29  ;;  %v2150_v2 = vsub.f32 %v1003_v58, %v4255_v61  ;;  %v4265_v5 = vand.u32 4294901760, %v997_v62 }
 0x152   : > { %3440 = vmatpush3.msra.mxu1 %v1144_v34  ;;  %3462 = vmatprep.subr.mxu0 %v1149_v31  ;;  %v1648_v46 = vand.u32 4294901760, %v1647_v55  ;;  %v1654_v60 = vsub.f32 %v1652_v52, %v1653_v56 }
 0x153   : > { %3441 = vmatprep.subr.mxu1 %v1151_v39  ;;  %3463 = vmatpush3.msra.mxu0 %v1149_v31  ;;  %v2157_v4 = vsub.f32 %v997_v62, %v4265_v5  ;;  %v2151_v24 = vand.u32 4294901760, %v2150_v2 }
 0x154   : > { %3442 = vmatpush3.msra.mxu1 %v1151_v39  ;;  %3464 = vmatprep.mubr.f32.mxu0 %v4150_v6  ;;  %v1655_v0 = vand.u32 4294901760, %v1654_v60 }
 0x155   : > { %3453 = vmatprep.subr.mxu1 %v4207_v3  ;;  %3474 = vmatprep.subr.mxu0 %v4221_v32  ;;  %v2152_v11 = vsub.f32 %v2150_v2, %v2151_v24  ;;  %v2158_v12 = vand.u32 4294901760, %v2157_v4 }
 0x156   : > { %3444 = vmatmul.mubr.f32.vlgmr.msra.gmra.mxu1 %v4181_v36  ;;  %3465 = vmatmul.mubr.f32.vlgmr.msra.gmra.mxu0 %v4181_v36 }
 0x157   : > { %3454 = vmatpush3.msra.mxu1 %v4207_v3  ;;  %3475 = vmatpush3.msra.mxu0 %v4221_v32  ;;  %v2159_v17 = vsub.f32 %v2157_v4, %v2158_v12 }
 0x158   : > { %3455 = vmatprep.subr.mxu1 %v4210_v15  ;;  %3476 = vmatprep.subr.mxu0 %v4228_v47 }
 0x159   : > { %3456 = vmatpush3.msra.mxu1 %v4210_v15  ;;  %3477 = vmatpush3.msra.mxu0 %v4228_v47  ;;  %v2160_v28 = vand.u32 4294901760, %v2159_v17 }
 0x15a   : > { %3457 = vmatprep.mubr.f32.mxu1 %v4157_v8  ;;  %3467 = vmatprep.subr.mxu1 %v4207_v3 }
 0x15b   : > { %3478 = vmatprep.mubr.f32.mxu0 %v4161_v10  ;;  %3488 = vmatprep.subr.mxu0 %v1645_v44 }
 0x15c   : > { %3458 = vmatmul.mubr.f32.vlgmr.msra.gmra.mxu1 %v4201_v51  ;;  %3479 = vmatmul.mubr.f32.vlgmr.msra.gmra.mxu0 %v4213_v16 }
 0x15d   : > { %3468 = vmatpush3.msra.mxu1 %v4207_v3  ;;  %3489 = vmatpush3.msra.mxu0 %v1645_v44  ;;  %v781_v3 = vadd.f32 %v4198_v50, %v650_v1  ;;  %v773_v50 = vadd.f32 %v4203_v54, %v643_v45  ;;  %v2153_v54 = vand.u32 4294901760, %v2152_v11 }
 0x15e   : > { %3469 = vmatprep.subr.mxu1 %v4210_v15  ;;  %3490 = vmatprep.subr.mxu0 %v1652_v52 }
 0x15f   : > { %3470 = vmatpush3.msra.mxu1 %v4210_v15  ;;  %3491 = vmatpush3.msra.mxu0 %v1652_v52  ;;  %v900_v26 = vadd.f32 %v3415_v25, %v781_v3  ;;  %v894_v13 = vadd.f32 %v893_v9, %v773_v50  ;;  %v1008_v15 = vpop.f32.mrf.mxu1 }
 0x160   : > { %3471 = vmatprep.mubr.f32.mxu1 %v4150_v6  ;;  %3481 = vmatprep.subr.mxu1 %v1648_v46 }
 0x161   : > { %3492 = vmatprep.mubr.f32.mxu0 %v4153_v7  ;;  %3502 = vmatprep.subr.mxu0 %v1646_v53  ;;  %v1015_v14 = vadd.f32 %v3431_v49, %v900_v26  ;;  %v1009_v27 = vadd.f32 %v1008_v15, %v894_v13 }
 0x162   : > { %3472 = vmatmul.mubr.f32.vlgmr.msra.gmra.mxu1 %v4181_v36  ;;  %3493 = vmatmul.mubr.f32.vlgmr.msra.gmra.mxu0 %v4190_v42 }
 0x163   : > { %3482 = vmatpush3.msra.mxu1 %v1648_v46  ;;  %3503 = vmatpush3.msra.mxu0 %v1646_v53  ;;  %v4293_v19 = vand.u32 4294901760, %v1015_v14  ;;  %v2570_v30 = vand.u32 4294901760, %v1009_v27 }
 0x164   : > { %3483 = vmatprep.subr.mxu1 %v1655_v0  ;;  %3504 = vmatprep.subr.mxu0 %v1653_v56 }
 0x165   : > { %3484 = vmatpush3.msra.mxu1 %v1655_v0  ;;  %3505 = vmatpush3.msra.mxu0 %v1653_v56  ;;  %v2655_v29 = vsub.f32 %v1015_v14, %v4293_v19  ;;  %v2662_v31 = vsub.f32 %v1009_v27, %v2570_v30 }
 0x166   : > { %3485 = vmatprep.mubr.f32.mxu1 %v4150_v6  ;;  %3495 = vmatprep.subr.mxu1 %v4221_v32 }
 0x167   : > { %3506 = vmatprep.mubr.f32.mxu0 %v4150_v6  ;;  %3516 = vmatprep.subr.mxu0 %v4255_v61  ;;  %v2663_v34 = vand.u32 4294901760, %v2662_v31 }
 0x168   : > { %3486 = vmatmul.mubr.f32.vlgmr.msra.gmra.mxu1 %v4181_v36  ;;  %3507 = vmatmul.mubr.f32.vlgmr.msra.gmra.mxu0 %v4181_v36 }
 0x169   : > { %3496 = vmatpush3.msra.mxu1 %v4221_v32  ;;  %3517 = vmatpush3.msra.mxu0 %v4255_v61  ;;  %v2664_v38 = vsub.f32 %v2662_v31, %v2663_v34 }
 0x16a   : > { %3497 = vmatprep.subr.mxu1 %v4228_v47  ;;  %3518 = vmatprep.subr.mxu0 %v4265_v5 }
 0x16b   : > { %3498 = vmatpush3.msra.mxu1 %v4228_v47  ;;  %3519 = vmatpush3.msra.mxu0 %v4265_v5 }
 0x16c   : > { %3499 = vmatprep.mubr.f32.mxu1 %v4157_v8  ;;  %3509 = vmatprep.subr.mxu1 %v4221_v32 }
 0x16d   : > { %3520 = vmatprep.mubr.f32.mxu0 %v4161_v10  ;;  %3530 = vmatprep.subr.mxu0 %v2150_v2 }
 0x16e   : > { %3500 = vmatmul.mubr.f32.vlgmr.msra.gmra.mxu1 %v4201_v51  ;;  %3521 = vmatmul.mubr.f32.vlgmr.msra.gmra.mxu0 %v4213_v16 }
 0x16f   : > { %3510 = vmatpush3.msra.mxu1 %v4221_v32  ;;  %3531 = vmatpush3.msra.mxu0 %v2150_v2  ;;  %v2656_v32 = vand.u32 4294901760, %v2655_v29 }
 0x170   : > { %3511 = vmatprep.subr.mxu1 %v4228_v47  ;;  %3532 = vmatprep.subr.mxu0 %v2157_v4 }
 0x171   : > { %3512 = vmatpush3.msra.mxu1 %v4228_v47  ;;  %3533 = vmatpush3.msra.mxu0 %v2157_v4  ;;  %v2657_v33 = vsub.f32 %v2655_v29, %v2656_v32 }
 0x172   : > { %3513 = vmatprep.mubr.f32.mxu1 %v4150_v6  ;;  %3523 = vmatprep.subr.mxu1 %v2153_v54 }
 0x173   : > { %3534 = vmatprep.mubr.f32.mxu0 %v4153_v7  ;;  %3544 = vmatprep.subr.mxu0 %v2151_v24  ;;  %v2658_v35 = vand.u32 4294901760, %v2657_v33 }
 0x174   : > { %3514 = vmatmul.mubr.f32.vlgmr.msra.gmra.mxu1 %v4181_v36  ;;  %3535 = vmatmul.mubr.f32.vlgmr.msra.gmra.mxu0 %v4190_v42 }
 0x175   : > { %3524 = vmatpush3.msra.mxu1 %v2153_v54  ;;  %3545 = vmatpush3.msra.mxu0 %v2151_v24 }
 0x176   : > { %3525 = vmatprep.subr.mxu1 %v2160_v28  ;;  %3546 = vmatprep.subr.mxu0 %v2158_v12 }
 0x177   : > { %3526 = vmatpush3.msra.mxu1 %v2160_v28  ;;  %3547 = vmatpush3.msra.mxu0 %v2158_v12 }
 0x178   : > { %3527 = vmatprep.mubr.f32.mxu1 %v4150_v6  ;;  %3537 = vmatprep.subr.mxu1 %v4255_v61 }
 0x179   : > { %3548 = vmatprep.mubr.f32.mxu0 %v4150_v6  ;;  %3558 = vmatprep.subr.mxu0 %v4293_v19 }
 0x17a   : > { %3528 = vmatmul.mubr.f32.vlgmr.msra.gmra.mxu1 %v4181_v36  ;;  %3549 = vmatmul.mubr.f32.vlgmr.msra.gmra.mxu0 %v4181_v36 }
 0x17b   : > { %3538 = vmatpush3.msra.mxu1 %v4255_v61  ;;  %3559 = vmatpush3.msra.mxu0 %v4293_v19 }
 0x17c   : > { %3539 = vmatprep.subr.mxu1 %v4265_v5  ;;  %3560 = vmatprep.subr.mxu0 %v2570_v30 }
 0x17d   : > { %3540 = vmatpush3.msra.mxu1 %v4265_v5  ;;  %3561 = vmatpush3.msra.mxu0 %v2570_v30 }
 0x17e   : > { %3541 = vmatprep.mubr.f32.mxu1 %v4157_v8  ;;  %3551 = vmatprep.subr.mxu1 %v4255_v61 }
 0x17f   : > { %3562 = vmatprep.mubr.f32.mxu0 %v4161_v10  ;;  %3572 = vmatprep.subr.mxu0 %v2655_v29  ;;  %v2665_v10 = vand.u32 4294901760, %v2664_v38 }
 0x180   : > { %3542 = vmatmul.mubr.f32.vlgmr.msra.gmra.mxu1 %v4201_v51  ;;  %3563 = vmatmul.mubr.f32.vlgmr.msra.gmra.mxu0 %v4213_v16 }
 0x181   : > { %3552 = vmatpush3.msra.mxu1 %v4255_v61  ;;  %3573 = vmatpush3.msra.mxu0 %v2655_v29 }
 0x182   : > { %3553 = vmatprep.subr.mxu1 %v4265_v5  ;;  %3574 = vmatprep.subr.mxu0 %v2662_v31 }
 0x183   : > { %3554 = vmatpush3.msra.mxu1 %v4265_v5  ;;  %3575 = vmatpush3.msra.mxu0 %v2662_v31 }
 0x184   : > { %3555 = vmatprep.mubr.f32.mxu1 %v4150_v6  ;;  %3565 = vmatprep.subr.mxu1 %v2658_v35 }
 0x185   : > { %3576 = vmatprep.mubr.f32.mxu0 %v4153_v7  ;;  %3586 = vmatprep.subr.mxu0 %v2656_v32 }
 0x186   : > { %3556 = vmatmul.mubr.f32.vlgmr.msra.gmra.mxu1 %v4181_v36  ;;  %3577 = vmatmul.mubr.f32.vlgmr.msra.gmra.mxu0 %v4190_v42 }
 0x187   : > { %3566 = vmatpush3.msra.mxu1 %v2658_v35  ;;  %3587 = vmatpush3.msra.mxu0 %v2656_v32 }
 0x188   : > { %3567 = vmatprep.subr.mxu1 %v2665_v10  ;;  %3588 = vmatprep.subr.mxu0 %v2663_v34 }
 0x189   : > { %3568 = vmatpush3.msra.mxu1 %v2665_v10  ;;  %3589 = vmatpush3.msra.mxu0 %v2663_v34 }
 0x18a   : > { %3569 = vmatprep.mubr.f32.mxu1 %v4150_v6  ;;  %3579 = vmatprep.subr.mxu1 %v4293_v19 }
 0x18b   : > { %3570 = vmatmul.mubr.f32.vlgmr.msra.gmra.mxu1 %v4181_v36  ;;  %3590 = vmatprep.mubr.f32.mxu0 %v4150_v6 }
 0x18c   : > { %3580 = vmatpush3.msra.mxu1 %v4293_v19  ;;  %3583 = vmatprep.mubr.f32.mxu1 %v4157_v8 }
 0x18d   : > { %3581 = vmatprep.subr.mxu1 %v2570_v30  ;;  %3591 = vmatmul.mubr.f32.vlgmr.msra.gmra.mxu0 %v4181_v36 }
 0x18e   : > { %3582 = vmatpush3.msra.mxu1 %v2570_v30 }
 0x18f   : > { %3593 = vmatprep.subr.mxu1 %v4293_v19  ;;  %3584 = vmatmul.mubr.f32.vlgmr.msra.gmra.mxu1 %v4201_v51 }
 0x190   : > { %3594 = vmatpush3.msra.mxu1 %v4293_v19  ;;  %3597 = vmatprep.mubr.f32.mxu1 %v4150_v6 }
 0x191   : > { %3595 = vmatprep.subr.mxu1 %v2570_v30 }
 0x192   : > { %3596 = vmatpush3.msra.mxu1 %v2570_v30 }
 0x193   : > { %3598 = vmatmul.mubr.f32.vlgmr.msra.gmra.mxu1 %v4181_v36 }
 0x20c   : > { %v3438_v7 = vpop.f32.mrf.mxu0 }
 0x20e   : > { %v1097_v42 = vpop.f32.mrf.mxu0 }
 0x210   : > { %v3452_v16 = vpop.f32.mrf.mxu0 }
 0x212   : > { %v1270_v8 = vpop.f32.mrf.mxu0 }
 0x216   : > { %v3445_v39 = vpop.f32.mrf.mxu1  ;;  %v3466_v43 = vpop.f32.mrf.mxu0 }
 0x217   : > { %v1195_v44 = vadd.f32 %v3445_v39, %v3438_v7 }
 0x218   : > { %v1188_v47 = vpop.f32.mrf.mxu1  ;;  %v1437_v48 = vpop.f32.mrf.mxu0 }
 0x219   : > { %v1189_v18 = vadd.f32 %v1188_v47, %v1097_v42  ;;  %v1278_v51 = vadd.f32 %v3452_v16, %v1195_v44 }
 0x21b   : > { %v1271_v21 = vadd.f32 %v1270_v8, %v1189_v18 }
 0x21c   : > { %v3459_v37 = vpop.f32.mrf.mxu1  ;;  %v3480_v52 = vpop.f32.mrf.mxu0 }
 0x21d   : > { %v1361_v6 = vadd.f32 %v3459_v37, %v1278_v51 }
 0x21e   : > { %v1352_v53 = vpop.f32.mrf.mxu1  ;;  %v1601_v20 = vpop.f32.mrf.mxu0 }
 0x21f   : > { %v1353_v23 = vadd.f32 %v1352_v53, %v1271_v21  ;;  %v1444_v36 = vadd.f32 %v3466_v43, %v1361_v6 }
 0x221   : > { %v1438_v40 = vadd.f32 %v1437_v48, %v1353_v23 }
 0x222   : > { %v3473_v41 = vpop.f32.mrf.mxu1  ;;  %v3494_v55 = vpop.f32.mrf.mxu0 }
 0x223   : > { %v1523_v56 = vadd.f32 %v3473_v41, %v1444_v36 }
 0x224   : > { %v1516_v57 = vpop.f32.mrf.mxu1  ;;  %v1774_v58 = vpop.f32.mrf.mxu0 }
 0x225   : > { %1527 = vst.msk [vmem:[%s4336_s18 + $0x8] sm:$0xff] %vm233_vm0, %v1523_v56  ;;  %v1517_v59 = vadd.f32 %v1516_v57, %v1438_v40 }
 0x227   : > { %1526 = vst.msk [vmem:[%s4336_s18] sm:$0xff] %vm233_vm0, %v1517_v59 }
 0x228   : > { %v3487_v46 = vpop.f32.mrf.mxu1  ;;  %v3508_v60 = vpop.f32.mrf.mxu0 }
 0x229   : > { %v1699_v61 = vadd.f32 %v3487_v46, %v3480_v52 }
 0x22a   : > { %v1692_v62 = vpop.f32.mrf.mxu1  ;;  %v1941_v63 = vpop.f32.mrf.mxu0 }
 0x22b   : > { %v1693_v0 = vadd.f32 %v1692_v62, %v1601_v20  ;;  %v1782_v1 = vadd.f32 %v3494_v55, %v1699_v61 }
 0x22d   : > { %v1775_v2 = vadd.f32 %v1774_v58, %v1693_v0 }
 0x22e   : > { %v3501_v5 = vpop.f32.mrf.mxu1  ;;  %v3522_v22 = vpop.f32.mrf.mxu0 }
 0x22f   : > { %v1865_v25 = vadd.f32 %v3501_v5, %v1782_v1 }
 0x230   : > { %v1856_v45 = vpop.f32.mrf.mxu1  ;;  %v2106_v3 = vpop.f32.mrf.mxu0 }
 0x231   : > { %v1857_v4 = vadd.f32 %v1856_v45, %v1775_v2  ;;  %v1948_v24 = vadd.f32 %v3508_v60, %v1865_v25 }
 0x233   : > { %v1942_v26 = vadd.f32 %v1941_v63, %v1857_v4 }
 0x234   : > { %v3515_v9 = vpop.f32.mrf.mxu1  ;;  %v3536_v49 = vpop.f32.mrf.mxu0 }
 0x235   : > { %v2027_v50 = vadd.f32 %v3515_v9, %v1948_v24 }
 0x236   : > { %v2020_v11 = vpop.f32.mrf.mxu1  ;;  %v2279_v12 = vpop.f32.mrf.mxu0 }
 0x237   : > { %3165 = vst.msk [vmem:[%s4336_s18 + $0x18] sm:$0xff] %vm233_vm0, %v2027_v50  ;;  %v2021_v13 = vadd.f32 %v2020_v11, %v1942_v26 }
 0x239   : > { %3164 = vst.msk [vmem:[%s4336_s18 + $0x10] sm:$0xff] %vm233_vm0, %v2021_v13 }
 0x23a   : > { %v3529_v14 = vpop.f32.mrf.mxu1  ;;  %v3550_v15 = vpop.f32.mrf.mxu0 }
 0x23b   : > { %v2204_v54 = vadd.f32 %v3529_v14, %v3522_v22 }
 0x23c   : > { %v2197_v17 = vpop.f32.mrf.mxu1  ;;  %v2446_v19 = vpop.f32.mrf.mxu0 }
 0x23d   : > { %v2198_v27 = vadd.f32 %v2197_v17, %v2106_v3  ;;  %v2287_v28 = vadd.f32 %v3536_v49, %v2204_v54 }
 0x23f   : > { %v2280_v29 = vadd.f32 %v2279_v12, %v2198_v27 }
 0x240   : > { %v3543_v30 = vpop.f32.mrf.mxu1  ;;  %v3564_v31 = vpop.f32.mrf.mxu0 }
 0x241   : > { %v2370_v32 = vadd.f32 %v3543_v30, %v2287_v28 }
 0x242   : > { %v2361_v33 = vpop.f32.mrf.mxu1  ;;  %v2611_v38 = vpop.f32.mrf.mxu0 }
 0x243   : > { %v2362_v34 = vadd.f32 %v2361_v33, %v2280_v29  ;;  %v2453_v35 = vadd.f32 %v3550_v15, %v2370_v32 }
 0x245   : > { %v2447_v10 = vadd.f32 %v2446_v19, %v2362_v34 }
 0x246   : > { %v3557_v7 = vpop.f32.mrf.mxu1  ;;  %v3578_v16 = vpop.f32.mrf.mxu0 }
 0x247   : > { %v2532_v42 = vadd.f32 %v3557_v7, %v2453_v35 }
 0x248   : > { %v2525_v8 = vpop.f32.mrf.mxu1  ;;  %v2784_v44 = vpop.f32.mrf.mxu0 }
 0x249   : > { %3167 = vst.msk [vmem:[%s4336_s18 + $0x28] sm:$0xff] %vm233_vm0, %v2532_v42  ;;  %v2526_v39 = vadd.f32 %v2525_v8, %v2447_v10 }
 0x24b   : > { %3166 = vst.msk [vmem:[%s4336_s18 + $0x20] sm:$0xff] %vm233_vm0, %v2526_v39  ;;  %v3571_v43 = vpop.f32.mrf.mxu1 }
 0x24c   : > { %v2709_v47 = vadd.f32 %v3571_v43, %v3564_v31 }
 0x24d   : > { %v2702_v48 = vpop.f32.mrf.mxu1  ;;  %v3592_v37 = vpop.f32.mrf.mxu0 }
 0x24e   : > { %v2703_v18 = vadd.f32 %v2702_v48, %v2611_v38  ;;  %v2792_v51 = vadd.f32 %v3578_v16, %v2709_v47 }
 0x24f   : > { %v3585_v21 = vpop.f32.mrf.mxu1  ;;  %v2951_v36 = vpop.f32.mrf.mxu0 }
 0x250   : > { %v2785_v52 = vadd.f32 %v2784_v44, %v2703_v18  ;;  %v2875_v6 = vadd.f32 %v3585_v21, %v2792_v51 }
 0x251   : > { %v2866_v53 = vpop.f32.mrf.mxu1 }
 0x252   : > { %v2867_v20 = vadd.f32 %v2866_v53, %v2785_v52  ;;  %v2958_v23 = vadd.f32 %v3592_v37, %v2875_v6 }
 0x253   : > { %v3599_v40 = vpop.f32.mrf.mxu1 }
 0x254   : > { %v2952_v41 = vadd.f32 %v2951_v36, %v2867_v20  ;;  %v3037_v55 = vadd.f32 %v3599_v40, %v2958_v23 }
 0x255   : > { %v3030_v56 = vpop.f32.mrf.mxu1 }
 0x256   : > { %3169 = vst.msk [vmem:[%s4336_s18 + $0x38] sm:$0xff] %vm233_vm0, %v3037_v55  ;;  %v3031_v57 = vadd.f32 %v3030_v56, %v2952_v41 }
 0x258   : > { %3168 = vst.msk [vmem:[%s4336_s18 + $0x30] sm:$0xff] %vm233_vm0, %v3031_v57 }
 0x259   : > { %3764 = shalt.err (!%p3761_p3)
}
 0x25a   : > { %s3765_s17 = scalar_lea.hbm %s4355_s29, 1024  ;;  %s3769_s26 = scalar_lea.hbm %s4407_s3, 2048 }
 0x25b   : > { %p3766_p11 = scmp.ne.s32.totalorder %s4355_s29, %s3765_s17  ;;  %p3770_p4 = scmp.lt.s32.totalorder %s4355_s29, %s4407_s3 }
 0x25c   : > { %p3771_p6 = scmp.lt.s32.totalorder %s3769_s26, %s3765_s17 }
 0x25d   : > { %p3767_p9 = pnand %p3766_p11, %p4422_p2 }
 0x25e   : > { %p3772_p8 = por %p3771_p6, %p3770_p4 }
 0x25f   : > { %p3768_p1 = pneg %p3767_p9 }
 0x261   : > { %p3773_p5 = pnand %p3772_p8, %p3768_p1 }
 0x263   : > { %3776 = shalt.err (!%p3773_p5)
}
 0x264   : > { %s3827_s30 = smov 128   ;;  %s3828_s18 = smov 8  }
 0x265   : > { %3610 = dma.vmem_to_hbm [thread:$0]  (%p4422_p2), %s4357_s27, 1024, %s4355_s29, %s3044_s16, %s3827_s30, %s3827_s30, %s3828_s18  }
 0x266 PF: > { %s3073_s20 = sand.u32 1, %s3807_s12   ;;  %p4423_p7 = scmp.ne.s32.totalorder %s4413_s19, 0 }
 0x267   : > { %p4424_p12 = scmp.ge.s32.totalorder %s3819_s15, 2  ;;  %s3074_s28 = scalar_lea.sflag [#allocation4], %s3073_s20 }
 0x269   : > { %p3624_p13 = pnand %p4424_p12, %p4423_p7 }
 0x26b   : > { %p3625_p0 = pneg %p3624_p13 }
 0x26d   : > { %3802 = dma.done.wait (%p3625_p0), %s3074_s28, 1024  }
 0x26e   : > { %3804 = vsyncadd (%p3625_p0), %s3074_s28, 4294966272  ;;  %p17_p10 = scmp.ge.s32.totalorder %s3927_s7, 4   ;;  %s4425_s12 = smov %s3811_s13 }
 0x26f   : > { %s4426_s13 = smov %s3815_s14  ;;  %s4427_s14 = smov %s3943_s11 }
 0x270   : > { %s4428_s15 = smov %s3927_s7  ;;  %19 = sbr.rel (!%p17_p10) target bundleno = 6 (0x6), region = 88 }
 0x275   :  { %3079 = vsyncpa [#allocation3], 1 }
 0x276   :  { %3081 = vsyncpa [#allocation3 + $0x1], 1 }
 0x277   :  { %3082 = vsyncpa [#allocation6], 1 }
 0x278   :  { %3083 = vsyncpa [#allocation4], 1 }
 0x279   :  { %3085 = vsyncpa [#allocation4 + $0x1], 1 }

</bundles_post_ra>
